<compile_context>
chip_gen: v7x
topology: tpu7x:2x2x1
jax: 0.10.0
libtpu: 0.0.40
codegen_flags: <defaults>
</compile_context>

<pallas_src>
import jax
import jax.numpy as jnp
from jax.experimental import pallas as pl
from jax.experimental.pallas import tpu as pltpu

LANES = 128      # vreg lane width (fast axis)
SUBLANES = 8     # f32 sublanes per vreg


def _round_up(a, m):
    return ((a + m - 1) // m) * m


def linear_kernel(x_ref, w_ref, b_ref, o_ref):
    # Pure VPU fused multiply-add; w/b come from SMEM via the scalar path.
    o_ref[...] = x_ref[...] * w_ref[0, 0] + b_ref[0, 0]


def linear_forward(x, weight, bias, *, tile_rows=2048, force_kernel=False):
    """Forward of torch.nn.Linear(1, 1, bias=True).

    x: (N, 1) f32, weight: (1, 1) f32, bias: (1,) f32 -> (N, 1) f32.
    """
    n, in_f = x.shape
    out_f, in_f_w = weight.shape
    assert in_f == 1 and out_f == 1 and in_f_w == 1, "kernel specialized to Linear(1,1)"

    w_smem = weight.reshape(1, 1)
    b_smem = bias.reshape(1, 1)

    # Small/medium-N fast path: below ~one tile the pallas_call is pure
    # launch + pad/reshape + per-step overhead; fused XLA elementwise wins.
    if not force_kernel and n < tile_rows * LANES:
        return x * w_smem[0, 0] + b_smem[0, 0]

    # Lane-dense layout: fold the batch onto the 128-lane axis.
    rows = pl.cdiv(n, LANES)
    padded_n = rows * LANES
    x_flat = x.reshape(-1)
    if padded_n != n:
        # Pad only to the next 128 boundary (<=127 elems); skipped when aligned,
        # which removes an entire extra HBM pass over x for aligned batches.
        x_flat = jnp.pad(x_flat, (0, padded_n - n))
    x2d = x_flat.reshape(rows, LANES)

    # Tile sizing:
    #  - multiple of 8 sublanes (f32 layout requirement),
    #  - capped at 4096 rows (2 MiB/tile) so double-buffered in+out stays well
    #    inside v5e's 16 MiB default scoped-VMEM limit,
    #  - capped so the grid has >=2 tiles where possible (v7x dual-TC sharding).
    tr = max(SUBLANES, _round_up(min(tile_rows, 4096), SUBLANES))
    if rows > SUBLANES:
        tr = min(tr, max(SUBLANES, _round_up(pl.cdiv(rows, 2), SUBLANES)))
    tr = min(tr, _round_up(rows, SUBLANES))

    grid = (pl.cdiv(rows, tr),)

    out2d = pl.pallas_call(
        linear_kernel,
        out_shape=jax.ShapeDtypeStruct((rows, LANES), x.dtype),
        grid=grid,
        in_specs=[
            pl.BlockSpec((tr, LANES), lambda i: (i, 0)),
            pl.BlockSpec(memory_space=pltpu.MemorySpace.SMEM),
            pl.BlockSpec(memory_space=pltpu.MemorySpace.SMEM),
        ],
        out_specs=pl.BlockSpec((tr, LANES), lambda i: (i, 0)),
        compiler_params=pltpu.CompilerParams(
            dimension_semantics=("parallel",),  # batch tiles are independent
        ),
    )(x2d, w_smem, b_smem)

    return out2d.reshape(padded_n)[:n].reshape(n, out_f)


if __name__ == "__main__":
    key = jax.random.PRNGKey(0)
    kx, kw, kb, kx2, kx3 = jax.random.split(key, 5)

    # Deterministic parameters (torch.nn.Linear(1, 1, bias=True) shapes).
    weight = jax.random.uniform(kw, (1, 1), jnp.float32, minval=-1.0, maxval=1.0)
    bias = jax.random.uniform(kb, (1,), jnp.float32, minval=-1.0, maxval=1.0)

    # 1) Small batch (N, 1) as the module expects -> XLA fast path.
    x = jax.random.normal(kx, (8, 1), jnp.float32)
    y = linear_forward(x, weight, bias)
    jax.block_until_ready(y)
    y_ref = x @ weight.T + bias
    assert y.shape == (8, 1)
    assert jnp.allclose(y, y_ref, atol=1e-5, rtol=1e-5)

    # 2) Non-128-aligned batch forced through the Pallas kernel:
    #    rows=17 -> tile_rows clamps to 16 -> grid of 2 tiles, partial last block.
    x_big = jax.random.normal(kx2, (2053, 1), jnp.float32)
    y_big = linear_forward(x_big, weight, bias, force_kernel=True)
    jax.block_until_ready(y_big)
    y_big_ref = x_big @ weight.T + bias
    assert y_big.shape == (2053, 1)
    assert jnp.allclose(y_big, y_big_ref, atol=1e-5, rtol=1e-5)

    # 3) 128-aligned batch forced through the kernel: pad skipped, 2 even tiles.
    x_al = jax.random.normal(kx3, (4096, 1), jnp.float32)
    y_al = linear_forward(x_al, weight, bias, force_kernel=True)
    jax.block_until_ready(y_al)
    y_al_ref = x_al @ weight.T + bias
    assert y_al.shape == (4096, 1)
    assert jnp.allclose(y_al, y_al_ref, atol=1e-5, rtol=1e-5)

    print("KERNEL_OK")
</pallas_src>

<mosaic_0001>
module attributes {stable_mosaic.version = 11 : i64} {
  func.func @linear_kernel(%arg0: i32, %arg1: memref<16x128xf32, #tpu.memory_space<vmem>>, %arg2: memref<1x1xf32, #tpu.memory_space<smem>>, %arg3: memref<1x1xf32, #tpu.memory_space<smem>>, %arg4: memref<16x128xf32, #tpu.memory_space<vmem>>) attributes {dimension_semantics = [#tpu.dimension_semantics<parallel>], iteration_bounds = array<i64: 2>, scalar_prefetch = 0 : i64, scratch_operands = 0 : i64, tpu.core_type = #tpu.core_type<tc>, window_params = [{transform_indices = @transform_0, window_bounds = array<i64: 16, 128>}, {transform_indices = @transform_1, window_bounds = array<i64: 1, 1>}, {transform_indices = @transform_2, window_bounds = array<i64: 1, 1>}, {transform_indices = @transform_3, window_bounds = array<i64: 16, 128>}]} {
    %c0 = arith.constant 0 : index
    %c0_0 = arith.constant 0 : index
    %0 = vector.load %arg1[%c0, %c0_0] : memref<16x128xf32, #tpu.memory_space<vmem>>, vector<16x128xf32>
    %c0_1 = arith.constant 0 : index
    %c0_2 = arith.constant 0 : index
    %1 = memref.load %arg2[%c0_1, %c0_2] : memref<1x1xf32, #tpu.memory_space<smem>>
    %2 = vector.broadcast %1 : f32 to vector<16x128xf32>
    %3 = arith.mulf %0, %2 : vector<16x128xf32>
    %c0_3 = arith.constant 0 : index
    %c0_4 = arith.constant 0 : index
    %4 = memref.load %arg3[%c0_3, %c0_4] : memref<1x1xf32, #tpu.memory_space<smem>>
    %5 = vector.broadcast %4 : f32 to vector<16x128xf32>
    %6 = arith.addf %3, %5 : vector<16x128xf32>
    %c0_5 = arith.constant 0 : index
    %c0_6 = arith.constant 0 : index
    %7 = vector.load %arg4[%c0_5, %c0_6] : memref<16x128xf32, #tpu.memory_space<vmem>>, vector<16x128xf32>
    tpu.vector_store %arg4[%c0_5, %c0_6], %6 {strides = array<i32>} : memref<16x128xf32, #tpu.memory_space<vmem>>, vector<16x128xf32>,
    return
  }
  func.func @transform_0(%arg0: i32) -> (i32, i32) {
    %c0_i32 = arith.constant 0 : i32
    %c0_i32_0 = arith.constant 0 : i32
    return %arg0, %c0_i32 : i32, i32
  }
  func.func @transform_1(%arg0: i32) -> (i32, i32) {
    %c0_i32 = arith.constant 0 : i32
    %c0_i32_0 = arith.constant 0 : i32
    %c0_i32_1 = arith.constant 0 : i32
    return %c0_i32, %c0_i32_0 : i32, i32
  }
  func.func @transform_2(%arg0: i32) -> (i32, i32) {
    %c0_i32 = arith.constant 0 : i32
    %c0_i32_0 = arith.constant 0 : i32
    %c0_i32_1 = arith.constant 0 : i32
    return %c0_i32, %c0_i32_0 : i32, i32
  }
  func.func @transform_3(%arg0: i32) -> (i32, i32) {
    %c0_i32 = arith.constant 0 : i32
    %c0_i32_0 = arith.constant 0 : i32
    return %arg0, %c0_i32 : i32, i32
  }
}

</mosaic_0001>

<bundles_post_ra>
// kernel: tpu_custom_call.1
= control target key start
LH: loop header
LB: loop body
LE: loop exit
PB: predicated region body
PF: predicated region fallthrough
CT: control target
= control target key end

     0   :  { %s677_s0 = inlined_call_operand.hbm [shape: f32[17,128], index: 0, kind: input, shape index: {}]   ;;  %s678_s1 = inlined_call_operand.<no memory space> [shape: f32[1,1], index: 1, kind: input, shape index: {}]   ;;  %s679_s2 = inlined_call_operand.<no memory space> [shape: f32[1,1], index: 2, kind: input, shape index: {}]   ;;  %s680_s3 = inlined_call_operand.hbm [shape: f32[17,128], index: 3, kind: output, shape index: {}]  }
   0x1   :  { %8 = sst [smem:[#allocation2]] %s678_s1 }
   0x2   :  { %9 = sst [smem:[#allocation3]] %s679_s2 }
   0x3   :  { %10 = vsyncpa [#allocation5], 0 }
   0x4   :  { %12 = vsyncpa [#allocation5 + $0x1], 0 }
   0x5   :  { %13 = vsyncpa [#allocation6], 0 }
   0x6   :  { %15 = vsyncpa [#allocation6 + $0x1], 0  ;;  %s507_s16 = smov 0   ;;  %s509_s17 = smov 0  }
   0x7   :  { %s511_s18 = smov 0   ;;  %s513_s19 = smov 0  }
   0x8 LB: > { %s528_s1 = sadd.s32 4294967295, %s473_s19   ;;  %s312_s2 = sadd.s32 4294967294, %s473_s19   ;;  %s473_s19 = sphi %s513_s19, %s690_s19   ;;  %s469_s18 = sphi %s511_s18, %s689_s18   ;;  %s465_s17 = sphi %s509_s17, %s688_s17   ;;  %s461_s16 = sphi %s507_s16, %s687_s16  }
   0x9   : > { %s532_s20 = sadd.s32 1, %s473_s19   ;;  %s28_s21 = sadd.s32 1, %s469_s18 }
   0xa   : > { %s25_s22 = ssub.s32 %s473_s19, %s532_s20  ;;  %p35_p0 = scmp.ne.s32.totalorder %s469_s18, %s465_s17 }
   0xb   : > { %p26_p1 = scmp.eq.s32.totalorder %s25_s22, 0  ;;  %p36_p2 = scmp.eq.s32.totalorder %s473_s19, 0 }
   0xc   : > { %p41_p3 = scmp.ne.s32.totalorder %s465_s17, %s461_s16  ;;  %p42_p4 = scmp.eq.s32.totalorder %s528_s1, 0 }
   0xd   : > { %s544_s23 = scalar_select %p26_p1, %s469_s18, %s28_s21  }
   0xe   : > { %p37_p5 = por %p36_p2, %p35_p0  ;;  %p546_p6 = por %p42_p4, %p41_p3 }
   0xf   : > { %p107_p7 = scmp.eq.s32.totalorder %s528_s1, 1  ;;  %p113_p8 = scmp.eq.s32.totalorder %s312_s2, 1 }
  0x10   : > { %p681_p11 = scmp.ge.s32.totalorder %s473_s19, 2 }
  0x11   : > { %p551_p9 = por %p107_p7, %p35_p0  ;;  %p555_p10 = por %p113_p8, %p41_p3 }
  0x12   : > { %135 = sbr.rel (%p681_p11) target bundleno = 60 (0x3c), region = 24 }
  0x13   : > { %s684_s26 = scalar_select %p555_p10, 1, 0 }
  0x19   : > { %138 = sbr.rel (!%p37_p5) target bundleno = 60 (0x3c), region = 28  ;;  %s139_s27 = sand.u32 (%p37_p5), 1, %s469_s18  }
  0x1a   : > { %s316_s28 = sshll.u32 (%p37_p5), %s473_s19, 1  ;;  %s315_s29 = sshll.u32 (%p37_p5), %s139_s27, 4 }
  0x1b   : > { %s145_s30 = ssub.s32 (%p37_p5), 3, %s316_s28  ;;  %s567_s6 = scalar_lea.sflag (%p37_p5), [#allocation5], %s139_s27 }
  0x1c   : > { %p146_p12 = scmp.lt.s32.totalorder (%p37_p5), %s145_s30, 2  ;;  %s143_s7 = scalar_lea.vmem (%p37_p5), [#allocation4], %s315_s29 }
  0x20   : > { %s692_s30 = smov (!%p146_p12, %s145_s30), 2 }
  0x21   : > { %s564_s4 = sshll.u32 %s692_s30, 7 }
  0x22   : > { %s150_s5 = ssub.s32 256, %s564_s4 }
  0x23   : > { %151 = vsyncadd %s567_s6, %s150_s5  ;;  %p318_p13 = scmp.ne.s32.totalorder %s564_s4, 0  ;;  %s334_s8 = sshll.u32 %s473_s19, 8 }
  0x24   : > { %s575_s11 = scalar_lea.hbm %s677_s0, %s334_s8  ;;  %s156_s12 = sshll.u32 %s143_s7, 4  ;;  %s577_s12 = int_to_ptr.vmem [resolvable:$true] %s156_s12 }
  0x25   : > { %s379_s13 = scalar_lea.hbm %s575_s11, %s564_s4  ;;  %s383_s2 = scalar_lea.hbm %s677_s0, 384 }
  0x26   : > { %p380_p0 = scmp.ne.s32.totalorder %s575_s11, %s379_s13  ;;  %p384_p3 = scmp.lt.u32.totalorder %s575_s11, %s677_s0 }
  0x27   : > { %p385_p4 = scmp.lt.u32.totalorder %s383_s2, %s379_s13  ;;  %p387_p7 = scmp.lt.u32.totalorder %s379_s13, %s575_s11 }
  0x28   : > { %p381_p1 = pnand %p380_p0, %p318_p13 }
  0x29   : > { %p386_p5 = por %p385_p4, %p384_p3 }
  0x2a   : > { %p382_p2 = pneg %p381_p1 }
  0x2b   : > { %p388_p8 = por %p387_p7, %p386_p5 }
  0x2d   : > { %p389_p12 = pnand %p388_p8, %p382_p2 }
  0x2f   : > { %392 = shalt.err (!%p389_p12)
}
  0x30   : > { %s393_s27 = scalar_lea.vmem %s577_s12, %s564_s4  ;;  %s475_s28 = smov [#allocation4]  }
  0x31   : > { %p394_p0 = scmp.ne.s32.totalorder %s577_s12, %s393_s27  ;;  %s397_s29 = sshll.u32 %s475_s28, 4  ;;  %s398_s29 = int_to_ptr.vmem [resolvable:$false] %s397_s29 }
  0x32   : > { %s399_s30 = scalar_lea.vmem %s398_s29, 512  ;;  %p400_p10 = scmp.lt.s32.totalorder %s577_s12, %s398_s29 }
  0x33   : > { %p395_p1 = pnand %p394_p0, %p318_p13  ;;  %p401_p3 = scmp.lt.s32.totalorder %s399_s30, %s393_s27 }
  0x35   : > { %p396_p11 = pneg %p395_p1  ;;  %p402_p4 = por %p401_p3, %p400_p10 }
  0x37   : > { %p403_p5 = pnand %p402_p4, %p396_p11 }
  0x39   : > { %406 = shalt.err (!%p403_p5)
}
  0x3a   : > { %s476_s5 = smov 128   ;;  %s477_s7 = smov 8  }
  0x3b   : > { %162 = dma.hbm_to_vmem [thread:$0]  (%p318_p13), %s575_s11, %s564_s4, %s577_s12, %s567_s6, %s476_s5, %s476_s5, %s477_s7  }
  0x3c PF: > { %p322_p2 = scmp.ge.s32.totalorder %s473_s19, 1  ;;  %p164_p7 = scmp.lt.s32.totalorder %s473_s19, 3 }
  0x3e   : > { %p165_p8 = pnand %p322_p2, %p164_p7 }
  0x3f   : > { %s607_s8 = sand.u32 (!%p165_p8), 1, %s465_s17  }
  0x40   : > { %168 = sbr.rel (%p165_p8) target bundleno = 112 (0x70), region = 32  ;;  %s323_s9 = sshll.u32 (!%p165_p8), %s607_s8, 4 }
  0x41   : > { %s171_s10 = scalar_lea.sflag (!%p165_p8), [#allocation5], %s607_s8  ;;  %s174_s13 = scalar_lea.vmem (!%p165_p8), [#allocation4], %s323_s9 }
  0x47   : > { %452 = dma.done.wait (%p546_p6), %s171_s10, 256  }
  0x48   : > { %454 = vsyncadd (%p546_p6), %s171_s10, 4294967040  ;;  %s209_s4 = sld [smem:[#allocation2]]  ;;  %v207_v0 = vld [vmem:[%s174_s13] sm:$0xff]  ;;  %v208_v3 = vld [vmem:[%s174_s13 + $0x8] sm:$0xff]  ;;  %s196_s11 = scalar_lea.vmem [#allocation7], %s323_s9 }
  0x49   : > { %s213_s6 = sld [smem:[#allocation3]]  ;;  %s220_s12 = scalar_lea.sflag [#allocation6], %s607_s8 }
  0x4a   : > { %s326_s24 = sshll.u32 (%p551_p9), %s528_s1, 1 }
  0x4b   : > { %s228_s14 = ssub.s32 (%p551_p9), 3, %s326_s24 }
  0x4c   : > { %p229_p6 = scmp.lt.s32.totalorder (%p551_p9), %s228_s14, 2 }
  0x4d   : > { %226 = sbr.rel (!%p551_p9) target bundleno = 112 (0x70), region = 40 }
  0x4e   : > { %v210_v1 = vstv %s209_s4 }
  0x4f   : > { %v214_v2 = vstv %s213_s6  ;;  %v211_v4 = vmul.f32 %v210_v1, %v207_v0  ;;  %v212_v5 = vmul.f32 %v210_v1, %v208_v3 }
  0x51   : > { %v215_v6 = vadd.f32 %v214_v2, %v211_v4  ;;  %v216_v7 = vadd.f32 %v214_v2, %v212_v5 }
  0x53   : > { %217 = vst [vmem:[%s196_s11] sm:$0xff] %v215_v6  ;;  %218 = vst [vmem:[%s196_s11 + $0x8] sm:$0xff] %v216_v7 }
  0x54   : > { %s694_s14 = smov (!%p229_p6, %s228_s14), 2 }
  0x55   : > { %s619_s15 = sshll.u32 %s694_s14, 7 }
  0x56   : > { %s233_s2 = ssub.s32 256, %s619_s15 }
  0x57   : > { %234 = vsyncadd %s220_s12, %s233_s2  ;;  %p328_p10 = scmp.ne.s32.totalorder %s619_s15, 0  ;;  %s335_s21 = sshll.u32 %s528_s1, 8 }
  0x58   : > { %s629_s27 = scalar_lea.hbm %s680_s3, %s335_s21  ;;  %s239_s28 = sshll.u32 %s196_s11, 4  ;;  %s631_s28 = int_to_ptr.vmem [resolvable:$true] %s239_s28 }
  0x59   : > { %s407_s29 = scalar_lea.vmem %s631_s28, %s619_s15  ;;  %s478_s30 = smov [#allocation7]  }
  0x5a   : > { %p408_p9 = scmp.ne.s32.totalorder %s631_s28, %s407_s29  ;;  %s411_s5 = sshll.u32 %s478_s30, 4  ;;  %s412_s5 = int_to_ptr.vmem [resolvable:$false] %s411_s5 }
  0x5b   : > { %s413_s1 = scalar_lea.vmem %s412_s5, 512  ;;  %p414_p12 = scmp.lt.s32.totalorder %s631_s28, %s412_s5 }
  0x5c   : > { %p409_p11 = pnand %p408_p9, %p328_p10  ;;  %p415_p0 = scmp.lt.s32.totalorder %s413_s1, %s407_s29 }
  0x5e   : > { %p410_p13 = pneg %p409_p11  ;;  %p416_p1 = por %p415_p0, %p414_p12 }
  0x60   : > { %p417_p3 = pnand %p416_p1, %p410_p13 }
  0x62   : > { %420 = shalt.err (!%p417_p3)
}
  0x63   : > { %s421_s7 = scalar_lea.hbm %s629_s27, %s619_s15  ;;  %s425_s13 = scalar_lea.hbm %s680_s3, 384 }
  0x64   : > { %p422_p4 = scmp.ne.s32.totalorder %s629_s27, %s421_s7  ;;  %p426_p7 = scmp.lt.u32.totalorder %s629_s27, %s680_s3 }
  0x65   : > { %p427_p8 = scmp.lt.u32.totalorder %s425_s13, %s421_s7  ;;  %p429_p9 = scmp.lt.u32.totalorder %s421_s7, %s629_s27 }
  0x66   : > { %p423_p5 = pnand %p422_p4, %p328_p10 }
  0x67   : > { %p428_p6 = por %p427_p8, %p426_p7 }
  0x68   : > { %p424_p2 = pneg %p423_p5 }
  0x69   : > { %p430_p11 = por %p429_p9, %p428_p6 }
  0x6b   : > { %p431_p13 = pnand %p430_p11, %p424_p2 }
  0x6d   : > { %434 = shalt.err (!%p431_p13)
}
  0x6e   : > { %s479_s11 = smov 128   ;;  %s480_s24 = smov 8  }
  0x6f   : > { %245 = dma.vmem_to_hbm [thread:$0]  (%p328_p10), %s631_s28, %s619_s15, %s629_s27, %s220_s12, %s479_s11, %s479_s11, %s480_s24  }
  0x70 PF: > { %s254_s14 = sand.u32 1, %s461_s16   ;;  %p685_p12 = scmp.ne.s32.totalorder %s684_s26, 0 }
  0x71   : > { %p686_p0 = scmp.ge.s32.totalorder %s473_s19, 2  ;;  %s255_s2 = scalar_lea.sflag [#allocation6], %s254_s14 }
  0x73   : > { %p339_p1 = pnand %p686_p0, %p685_p12 }
  0x75   : > { %456 = dma.done.wait (!%p339_p1), %s255_s2, 256  }
  0x76   : > { %458 = vsyncadd (!%p339_p1), %s255_s2, 4294967040  ;;  %p18_p3 = scmp.ge.s32.totalorder %s532_s20, 4   ;;  %s687_s16 = smov %s465_s17 }
  0x77   : > { %s688_s17 = smov %s469_s18  ;;  %s689_s18 = smov %s544_s23 }
  0x78   : > { %s690_s19 = smov %s532_s20  ;;  %20 = sbr.rel (!%p18_p3) target bundleno = 8 (0x8), region = 77 }
  0x7f   :  { %260 = vsyncpa [#allocation5], 1 }
  0x80   :  { %262 = vsyncpa [#allocation5 + $0x1], 1 }
  0x81   :  { %263 = vsyncpa [#allocation6], 1 }
  0x82   :  { %265 = vsyncpa [#allocation6 + $0x1], 1 }

</bundles_post_ra>
